<compile_context>
chip_gen: v6e
topology: v6e:2x2x1
jax: 0.10.0
libtpu: 0.0.40
codegen_flags: <defaults>
</compile_context>

<pallas_src>
import functools
import math

import numpy as np

import jax
import jax.numpy as jnp
from jax.experimental import pallas as pl
from jax.experimental.pallas import tpu as pltpu


# --------------------------------------------------------------------------
# Small chip-detection / sizing helpers
# --------------------------------------------------------------------------
def _round_up(n, m):
    return ((n + m - 1) // m) * m


def _device_kind():
    try:
        return jax.devices()[0].device_kind.lower()
    except Exception:
        return ""


def _is_v5e(kind):
    return any(s in kind for s in ("v5e", "v5 lite", "v5lite"))


def _is_v7(kind):
    return "v7" in kind


def _mxu_rows(kind):
    # v6e/v7x MXU is 256x256; v5e (and older/unknown) is 128x128.
    return 256 if ("v6" in kind or "v7" in kind) else 128


def _default_gate_dtype(kind):
    # bf16 VPU/EUP is native on v6e/v7x; v5e (and unknown chips) stay f32.
    if (not kind) or _is_v5e(kind):
        return jnp.float32
    return jnp.bfloat16


def _pick_block_b(batch, kind):
    bb = min(_round_up(max(batch, 1), 8), _mxu_rows(kind))
    if _is_v7(kind) and batch > 8:
        # At least 2 batch tiles so the 'parallel' axis feeds both TensorCores.
        bb = min(bb, max(_round_up(pl.cdiv(batch, 2), 8), 8))
    return bb


# --------------------------------------------------------------------------
# Kernel
# --------------------------------------------------------------------------
def hawkes_lstm_cell_kernel(v_ref, c_ref, ctgt_ref, w_ref, b_ref, out_ref, *,
                            gate_dtype):
    """One batch-tile of the Hawkes LSTM cell.

    v_ref    : (Bt, D+H) bf16  concatenated [x | h_t]
    c_ref    : (Bt, H)   f32   cell state
    ctgt_ref : (Bt, H)   f32   cell-state target
    w_ref    : (D+H, 7H) bf16  packed gate weights (fed to the MXU as bf16)
    b_ref    : (1, 7H)   f32   packed gate biases
    out_ref  : (Bt, 4H)        packed [c_i | c_target | output | decay]
    """
    H = c_ref.shape[-1]

    # Single bf16 x bf16 -> f32 MXU pass for all 7 gate Linears (no upcast of
    # the resident weight tile).
    pre = jnp.dot(v_ref[...], w_ref[...],
                  preferred_element_type=jnp.float32) + b_ref[...]

    def gate(k, fn):
        # Lane-aligned static column slice (H is a multiple of 128).  The
        # nonlinearity runs in gate_dtype (bf16 on v6e/v7x, f32 on v5e); the
        # state math below is always f32.
        g = pre[:, k * H:(k + 1) * H].astype(gate_dtype)
        return fn(g).astype(jnp.float32)

    inpt          = gate(0, jax.nn.sigmoid)
    forget        = gate(1, jax.nn.sigmoid)
    output        = gate(2, jax.nn.sigmoid)
    input_target  = gate(3, jax.nn.sigmoid)
    forget_target = gate(4, jax.nn.sigmoid)
    z_i           = gate(5, jnp.tanh)

    # Softplus with beta=10, threshold=20 (torch.nn.Softplus defaults), f32,
    # overflow-safe: softplus(t)/beta = (log1p(exp(-|t|)) + max(t, 0)) / beta.
    beta = 10.0
    d_pre = pre[:, 6 * H:7 * H]
    t = beta * d_pre
    soft = (jnp.log1p(jnp.exp(-jnp.abs(t))) + jnp.maximum(t, 0.0)) * (1.0 / beta)
    decay = jnp.where(t > 20.0, d_pre, soft)

    c_i   = forget * c_ref[...] + inpt * z_i
    c_tgt = forget_target * ctgt_ref[...] + input_target * z_i

    # Single lane-dense packed output slab (one unmasked store / output DMA).
    od = out_ref.dtype
    out_ref[:, 0 * H:1 * H] = c_i.astype(od)
    out_ref[:, 1 * H:2 * H] = c_tgt.astype(od)
    out_ref[:, 2 * H:3 * H] = output.astype(od)
    out_ref[:, 3 * H:4 * H] = decay.astype(od)


# --------------------------------------------------------------------------
# Wrapper
# --------------------------------------------------------------------------
def hawkes_lstm_cell(x, h_t, c_t, c_target, w, b, *,
                     block_b=None, gate_dtype=None, out_dtype=jnp.float32):
    """Forward of HawkesLSTMCell. Returns (c_i, c_target, output, decay)."""
    B, D = x.shape
    H = h_t.shape[-1]
    DH = D + H
    H7 = 7 * H
    if H % 128 != 0:
        raise ValueError(
            f"hidden_size must be a multiple of 128 (got {H}): gate column "
            "slices and the packed output slab must be lane-aligned.")
    assert w.shape == (DH, H7) and b.shape[-1] == H7

    kind = _device_kind()
    if gate_dtype is None:
        gate_dtype = _default_gate_dtype(kind)
    if block_b is None:
        block_b = _pick_block_b(B, kind)
    block_b = max(8, (int(block_b) // 8) * 8)
    block_b = min(block_b, _round_up(B, 8))

    # bf16 activations + bf16 weights feed the MXU directly (f32 accumulate).
    # Note: K = D+H is NOT padded (weight-DMA-bound regime; see header).
    v = jnp.concatenate(
        [x.astype(jnp.bfloat16), h_t.astype(jnp.bfloat16)], axis=1)
    w = w.astype(jnp.bfloat16)
    b = b.astype(jnp.float32).reshape(1, H7)
    c_t = c_t.astype(jnp.float32)
    c_target = c_target.astype(jnp.float32)

    # Ragged batch: pad to a multiple of the batch tile, slice off afterwards.
    Bp = _round_up(B, block_b)
    pad = Bp - B
    if pad:
        v = jnp.pad(v, ((0, pad), (0, 0)))
        c_t = jnp.pad(c_t, ((0, pad), (0, 0)))
        c_target = jnp.pad(c_target, ((0, pad), (0, 0)))
    grid = (Bp // block_b,)

    # W/b index_maps are constant across batch tiles; once the weight block is
    # big, single-buffer it (double-buffering a constant block buys no overlap,
    # just 2x VMEM — matters on v7x's 64 MiB VMEM).
    w_bytes = DH * H7 * 2
    b_bytes = H7 * 4
    single_buffer_consts = w_bytes > (4 << 20)
    if single_buffer_consts:
        w_spec = pl.BlockSpec((DH, H7), lambda i: (0, 0),
                              pipeline_mode=pl.Buffered(1))
        b_spec = pl.BlockSpec((1, H7), lambda i: (0, 0),
                              pipeline_mode=pl.Buffered(1))
    else:
        w_spec = pl.BlockSpec((DH, H7), lambda i: (0, 0))
        b_spec = pl.BlockSpec((1, H7), lambda i: (0, 0))

    # VMEM budget sized to the actual blocks (guard for v7x's smaller VMEM).
    out_itemsize = np.dtype(out_dtype).itemsize
    est = (2 * block_b * DH * 2                        # v (bf16), 2 buffers
           + 2 * 2 * block_b * H * 4                   # c_t / c_target, 2 buffers
           + (1 if single_buffer_consts else 2) * (w_bytes + b_bytes)
           + 2 * block_b * 4 * H * out_itemsize        # packed output, 2 buffers
           + 2 * block_b * H7 * 4)                     # pre + gate temporaries
    vmem_cap = (60 << 20) if _is_v7(kind) else (110 << 20)
    vmem_limit = int(min(max(int(est * 1.5) + (8 << 20), 32 << 20), vmem_cap))
    # TODO(synk): for very large H on v7x (weight block > ~20 MiB) the 7H
    # gate-column dimension needs its own grid axis instead of one resident block.

    kernel = functools.partial(hawkes_lstm_cell_kernel, gate_dtype=gate_dtype)

    packed = pl.pallas_call(
        kernel,
        grid=grid,
        in_specs=[
            pl.BlockSpec((block_b, DH), lambda i: (i, 0)),   # v = [x | h_t]
            pl.BlockSpec((block_b, H),  lambda i: (i, 0)),   # c_t
            pl.BlockSpec((block_b, H),  lambda i: (i, 0)),   # c_target
            w_spec,                                          # packed W (resident)
            b_spec,                                          # packed bias
        ],
        out_specs=pl.BlockSpec((block_b, 4 * H), lambda i: (i, 0)),
        out_shape=jax.ShapeDtypeStruct((Bp, 4 * H), out_dtype),
        compiler_params=pltpu.CompilerParams(
            dimension_semantics=("parallel",),
            vmem_limit_bytes=vmem_limit),
    )(v, c_t, c_target, w, b)

    # TODO(synk): fusing the time-step loop (T as a trailing 'arbitrary' grid
    # axis, W/b resident, h/c carried in VMEM scratch) needs the parent
    # CTLSTM's inter-event decay recurrence, which lives outside this module's
    # forward; the cell kernel is shaped so that fusion is a grid change.

    # Zero-cost layout plumbing: slice the packed slab (and drop pad rows).
    packed = packed[:B]
    c_i    = packed[:, 0 * H:1 * H]
    c_tgt  = packed[:, 1 * H:2 * H]
    output = packed[:, 2 * H:3 * H]
    decay  = packed[:, 3 * H:4 * H]
    return c_i, c_tgt, output, decay


# --------------------------------------------------------------------------
# Params / reference
# --------------------------------------------------------------------------
def init_params(key, input_dim, hidden_size):
    """Deterministic init mimicking nn.Linear default (uniform +-1/sqrt(fan_in)).

    Returns W packed as (input_dim + hidden, 7*hidden) in bf16 and bias
    (1, 7*hidden) in f32. Gate order: input_g, forget_g, output_g,
    input_target, forget_target, z_gate, decay_layer.
    """
    fan_in = input_dim + hidden_size
    bound = 1.0 / math.sqrt(fan_in)
    n_gates = 7

    kw, kb = jax.random.split(key)
    w_full = jax.random.uniform(
        kw, (fan_in, n_gates * hidden_size),
        minval=-bound, maxval=bound, dtype=jnp.float32)
    bias = jax.random.uniform(
        kb, (1, n_gates * hidden_size),
        minval=-bound, maxval=bound, dtype=jnp.float32)
    # bf16 weight storage halves HBM bytes and feeds the MXU natively.
    return w_full.astype(jnp.bfloat16), bias


def reference_forward(x, h_t, c_t, c_target, w, b, hidden_size,
                      gate_dtype=jnp.float32):
    """Pure-JAX reference mirroring the kernel's numerics (bf16 MXU operands,
    gate nonlinearities in gate_dtype, f32 state math and softplus)."""
    v = jnp.concatenate(
        [x.astype(jnp.bfloat16), h_t.astype(jnp.bfloat16)], axis=1)
    pre = jnp.dot(v, w.astype(jnp.bfloat16),
                  preferred_element_type=jnp.float32) + b.astype(jnp.float32)
    H = hidden_size

    def gate(k, fn):
        g = pre[:, k * H:(k + 1) * H].astype(gate_dtype)
        return fn(g).astype(jnp.float32)

    inpt = gate(0, jax.nn.sigmoid)
    forget = gate(1, jax.nn.sigmoid)
    output = gate(2, jax.nn.sigmoid)
    input_target = gate(3, jax.nn.sigmoid)
    forget_target = gate(4, jax.nn.sigmoid)
    z_i = gate(5, jnp.tanh)

    beta = 10.0
    d_pre = pre[:, 6 * H:7 * H]
    t = beta * d_pre
    soft = (jnp.log1p(jnp.exp(-jnp.abs(t))) + jnp.maximum(t, 0.0)) / beta
    decay = jnp.where(t > 20.0, d_pre, soft)

    c_i = forget * c_t.astype(jnp.float32) + inpt * z_i
    c_tgt = forget_target * c_target.astype(jnp.float32) + input_target * z_i
    return c_i, c_tgt, output, decay


# --------------------------------------------------------------------------
# Self-test
# --------------------------------------------------------------------------
if __name__ == "__main__":
    key = jax.random.PRNGKey(0)
    k_par, k_x, k_h, k_c, k_ct, k2 = jax.random.split(key, 6)

    kind = _device_kind()
    auto_gate = _default_gate_dtype(kind)

    # ---- Config 1: default chip-aware path (auto block_b / gate dtype) ----
    batch, input_dim, hidden = 8, 32, 128
    w, b = init_params(k_par, input_dim, hidden)
    x = jax.random.normal(k_x, (batch, input_dim), dtype=jnp.float32)
    h_t = jax.random.normal(k_h, (batch, hidden), dtype=jnp.float32)
    c_t = jax.random.normal(k_c, (batch, hidden), dtype=jnp.float32)
    c_target = jax.random.normal(k_ct, (batch, hidden), dtype=jnp.float32)

    outs = hawkes_lstm_cell(x, h_t, c_t, c_target, w, b)
    outs = jax.block_until_ready(outs)

    refs = reference_forward(x, h_t, c_t, c_target, w, b, hidden,
                             gate_dtype=auto_gate)
    # Tolerance: with f32 gate math the only deltas are Mosaic-vs-XLA
    # transcendental/accumulation details (tiny); with bf16 gate math the gate
    # values may round to adjacent bf16 ULPs between implementations.
    tol = 2e-3 if auto_gate is jnp.float32 else 3e-2
    for o, r in zip(outs, refs):
        assert o.shape == r.shape and o.dtype == r.dtype
        assert jnp.allclose(o, r, atol=tol, rtol=tol)

    # ---- Config 2: ragged batch + multi-tile grid, forced f32 gate math ----
    batch2 = 20
    kx2, kh2, kc2, kct2 = jax.random.split(k2, 4)
    x2 = jax.random.normal(kx2, (batch2, input_dim), dtype=jnp.float32)
    h2 = jax.random.normal(kh2, (batch2, hidden), dtype=jnp.float32)
    c2 = jax.random.normal(kc2, (batch2, hidden), dtype=jnp.float32)
    ct2 = jax.random.normal(kct2, (batch2, hidden), dtype=jnp.float32)

    outs2 = hawkes_lstm_cell(x2, h2, c2, ct2, w, b,
                             block_b=8, gate_dtype=jnp.float32)
    outs2 = jax.block_until_ready(outs2)
    refs2 = reference_forward(x2, h2, c2, ct2, w, b, hidden,
                              gate_dtype=jnp.float32)
    for o, r in zip(outs2, refs2):
        assert o.shape == r.shape and o.dtype == r.dtype
        assert jnp.allclose(o, r, atol=2e-3, rtol=2e-3)

    print("KERNEL_OK")
</pallas_src>

<mosaic_0001>
module attributes {stable_mosaic.version = 11 : i64} {
  func.func @hawkes_lstm_cell_kernel(%arg0: i32, %arg1: memref<8x160xbf16, #tpu.memory_space<vmem>>, %arg2: memref<8x128xf32, #tpu.memory_space<vmem>>, %arg3: memref<8x128xf32, #tpu.memory_space<vmem>>, %arg4: memref<160x896xbf16, #tpu.memory_space<vmem>>, %arg5: memref<1x896xf32, #tpu.memory_space<vmem>>, %arg6: memref<8x512xf32, #tpu.memory_space<vmem>>) attributes {dimension_semantics = [#tpu.dimension_semantics<parallel>], iteration_bounds = array<i64: 1>, scalar_prefetch = 0 : i64, scratch_operands = 0 : i64, tpu.core_type = #tpu.core_type<tc>, window_params = [{transform_indices = @transform_0, window_bounds = array<i64: 8, 160>}, {transform_indices = @transform_1, window_bounds = array<i64: 8, 128>}, {transform_indices = @transform_2, window_bounds = array<i64: 8, 128>}, {pipeline_mode = #tpu.pipeline_mode<synchronous>, transform_indices = @transform_3, window_bounds = array<i64: 160, 896>}, {pipeline_mode = #tpu.pipeline_mode<synchronous>, transform_indices = @transform_4, window_bounds = array<i64: 1, 896>}, {transform_indices = @transform_5, window_bounds = array<i64: 8, 512>}]} {
    %c0 = arith.constant 0 : index
    %c0_0 = arith.constant 0 : index
    %0 = vector.load %arg1[%c0, %c0_0] : memref<8x160xbf16, #tpu.memory_space<vmem>>, vector<8x160xbf16>
    %c0_1 = arith.constant 0 : index
    %c0_2 = arith.constant 0 : index
    %1 = vector.load %arg4[%c0_1, %c0_2] : memref<160x896xbf16, #tpu.memory_space<vmem>>, vector<160x896xbf16>
    %cst = arith.constant dense<0.000000e+00> : vector<8x896xf32>
    %2 = tpu.matmul %0, %1, %cst {dimension_numbers = #tpu.dot_dimension_numbers<[1], [0], [0], [1], [0, 0, 1, 1], [], []>} : vector<8x160xbf16>, vector<160x896xbf16>, vector<8x896xf32> -> vector<8x896xf32>
    %c0_3 = arith.constant 0 : index
    %c0_4 = arith.constant 0 : index
    %3 = vector.load %arg5[%c0_3, %c0_4] : memref<1x896xf32, #tpu.memory_space<vmem>>, vector<1x896xf32>
    %4 = vector.broadcast %3 : vector<1x896xf32> to vector<8x896xf32>
    %5 = arith.addf %2, %4 : vector<8x896xf32>
    %6 = vector.extract_strided_slice %5 {offsets = [0, 0], sizes = [8, 128], strides = [1, 1]} : vector<8x896xf32> to vector<8x128xf32>
    %7 = arith.truncf %6 : vector<8x128xf32> to vector<8x128xbf16>
    %8 = arith.negf %7 : vector<8x128xbf16>
    %9 = math.exp %8 : vector<8x128xbf16>
    %cst_5 = arith.constant 1.000000e+00 : bf16
    %10 = vector.broadcast %cst_5 : bf16 to vector<8x128xbf16>
    %11 = arith.addf %10, %9 : vector<8x128xbf16>
    %12 = arith.divf %10, %11 : vector<8x128xbf16>
    %13 = arith.extf %12 : vector<8x128xbf16> to vector<8x128xf32>
    %14 = vector.extract_strided_slice %5 {offsets = [0, 128], sizes = [8, 128], strides = [1, 1]} : vector<8x896xf32> to vector<8x128xf32>
    %15 = arith.truncf %14 : vector<8x128xf32> to vector<8x128xbf16>
    %16 = arith.negf %15 : vector<8x128xbf16>
    %17 = math.exp %16 : vector<8x128xbf16>
    %cst_6 = arith.constant 1.000000e+00 : bf16
    %18 = vector.broadcast %cst_6 : bf16 to vector<8x128xbf16>
    %19 = arith.addf %18, %17 : vector<8x128xbf16>
    %20 = arith.divf %18, %19 : vector<8x128xbf16>
    %21 = arith.extf %20 : vector<8x128xbf16> to vector<8x128xf32>
    %22 = vector.extract_strided_slice %5 {offsets = [0, 256], sizes = [8, 128], strides = [1, 1]} : vector<8x896xf32> to vector<8x128xf32>
    %23 = arith.truncf %22 : vector<8x128xf32> to vector<8x128xbf16>
    %24 = arith.negf %23 : vector<8x128xbf16>
    %25 = math.exp %24 : vector<8x128xbf16>
    %cst_7 = arith.constant 1.000000e+00 : bf16
    %26 = vector.broadcast %cst_7 : bf16 to vector<8x128xbf16>
    %27 = arith.addf %26, %25 : vector<8x128xbf16>
    %28 = arith.divf %26, %27 : vector<8x128xbf16>
    %29 = arith.extf %28 : vector<8x128xbf16> to vector<8x128xf32>
    %30 = vector.extract_strided_slice %5 {offsets = [0, 384], sizes = [8, 128], strides = [1, 1]} : vector<8x896xf32> to vector<8x128xf32>
    %31 = arith.truncf %30 : vector<8x128xf32> to vector<8x128xbf16>
    %32 = arith.negf %31 : vector<8x128xbf16>
    %33 = math.exp %32 : vector<8x128xbf16>
    %cst_8 = arith.constant 1.000000e+00 : bf16
    %34 = vector.broadcast %cst_8 : bf16 to vector<8x128xbf16>
    %35 = arith.addf %34, %33 : vector<8x128xbf16>
    %36 = arith.divf %34, %35 : vector<8x128xbf16>
    %37 = arith.extf %36 : vector<8x128xbf16> to vector<8x128xf32>
    %38 = vector.extract_strided_slice %5 {offsets = [0, 512], sizes = [8, 128], strides = [1, 1]} : vector<8x896xf32> to vector<8x128xf32>
    %39 = arith.truncf %38 : vector<8x128xf32> to vector<8x128xbf16>
    %40 = arith.negf %39 : vector<8x128xbf16>
    %41 = math.exp %40 : vector<8x128xbf16>
    %cst_9 = arith.constant 1.000000e+00 : bf16
    %42 = vector.broadcast %cst_9 : bf16 to vector<8x128xbf16>
    %43 = arith.addf %42, %41 : vector<8x128xbf16>
    %44 = arith.divf %42, %43 : vector<8x128xbf16>
    %45 = arith.extf %44 : vector<8x128xbf16> to vector<8x128xf32>
    %46 = vector.extract_strided_slice %5 {offsets = [0, 640], sizes = [8, 128], strides = [1, 1]} : vector<8x896xf32> to vector<8x128xf32>
    %47 = arith.truncf %46 : vector<8x128xf32> to vector<8x128xbf16>
    %48 = math.tanh %47 : vector<8x128xbf16>
    %49 = arith.extf %48 : vector<8x128xbf16> to vector<8x128xf32>
    %50 = vector.extract_strided_slice %5 {offsets = [0, 768], sizes = [8, 128], strides = [1, 1]} : vector<8x896xf32> to vector<8x128xf32>
    %cst_10 = arith.constant 1.000000e+01 : f32
    %51 = vector.broadcast %cst_10 : f32 to vector<8x128xf32>
    %52 = arith.mulf %51, %50 : vector<8x128xf32>
    %53 = math.absf %52 : vector<8x128xf32>
    %cst_11 = arith.constant 0.000000e+00 : f32
    %54 = vector.broadcast %cst_11 : f32 to vector<8x128xf32>
    %55 = arith.subf %54, %53 : vector<8x128xf32>
    %56 = math.exp %55 : vector<8x128xf32>
    %57 = math.log1p %56 : vector<8x128xf32>
    %cst_12 = arith.constant 0.000000e+00 : f32
    %58 = vector.broadcast %cst_12 : f32 to vector<8x128xf32>
    %59 = arith.maximumf %52, %58 : vector<8x128xf32>
    %60 = arith.addf %57, %59 : vector<8x128xf32>
    %cst_13 = arith.constant 1.000000e-01 : f32
    %61 = vector.broadcast %cst_13 : f32 to vector<8x128xf32>
    %62 = arith.mulf %60, %61 : vector<8x128xf32>
    %cst_14 = arith.constant 2.000000e+01 : f32
    %63 = vector.broadcast %cst_14 : f32 to vector<8x128xf32>
    %64 = arith.cmpf ogt, %52, %63 : vector<8x128xf32>
    %65 = arith.select %64, %50, %62 : vector<8x128xi1>, vector<8x128xf32>
    %c0_15 = arith.constant 0 : index
    %c0_16 = arith.constant 0 : index
    %66 = vector.load %arg2[%c0_15, %c0_16] : memref<8x128xf32, #tpu.memory_space<vmem>>, vector<8x128xf32>
    %67 = arith.mulf %21, %66 : vector<8x128xf32>
    %68 = arith.mulf %13, %49 : vector<8x128xf32>
    %69 = arith.addf %67, %68 : vector<8x128xf32>
    %c0_17 = arith.constant 0 : index
    %c0_18 = arith.constant 0 : index
    %70 = vector.load %arg3[%c0_17, %c0_18] : memref<8x128xf32, #tpu.memory_space<vmem>>, vector<8x128xf32>
    %71 = arith.mulf %45, %70 : vector<8x128xf32>
    %72 = arith.mulf %37, %49 : vector<8x128xf32>
    %73 = arith.addf %71, %72 : vector<8x128xf32>
    %c0_19 = arith.constant 0 : index
    %c0_20 = arith.constant 0 : index
    %74 = vector.load %arg6[%c0_19, %c0_20] : memref<8x512xf32, #tpu.memory_space<vmem>>, vector<8x128xf32>
    tpu.vector_store %arg6[%c0_19, %c0_20], %69 {strides = array<i32>} : memref<8x512xf32, #tpu.memory_space<vmem>>, vector<8x128xf32>,
    %c0_21 = arith.constant 0 : index
    %c128 = arith.constant 128 : index
    %75 = vector.load %arg6[%c0_21, %c128] : memref<8x512xf32, #tpu.memory_space<vmem>>, vector<8x128xf32>
    tpu.vector_store %arg6[%c0_21, %c128], %73 {strides = array<i32>} : memref<8x512xf32, #tpu.memory_space<vmem>>, vector<8x128xf32>,
    %c0_22 = arith.constant 0 : index
    %c256 = arith.constant 256 : index
    %76 = vector.load %arg6[%c0_22, %c256] : memref<8x512xf32, #tpu.memory_space<vmem>>, vector<8x128xf32>
    tpu.vector_store %arg6[%c0_22, %c256], %29 {strides = array<i32>} : memref<8x512xf32, #tpu.memory_space<vmem>>, vector<8x128xf32>,
    %c0_23 = arith.constant 0 : index
    %c384 = arith.constant 384 : index
    %77 = vector.load %arg6[%c0_23, %c384] : memref<8x512xf32, #tpu.memory_space<vmem>>, vector<8x128xf32>
    tpu.vector_store %arg6[%c0_23, %c384], %65 {strides = array<i32>} : memref<8x512xf32, #tpu.memory_space<vmem>>, vector<8x128xf32>,
    return
  }
  func.func @transform_0(%arg0: i32) -> (i32, i32) {
    %c0_i32 = arith.constant 0 : i32
    %c0_i32_0 = arith.constant 0 : i32
    return %arg0, %c0_i32 : i32, i32
  }
  func.func @transform_1(%arg0: i32) -> (i32, i32) {
    %c0_i32 = arith.constant 0 : i32
    %c0_i32_0 = arith.constant 0 : i32
    return %arg0, %c0_i32 : i32, i32
  }
  func.func @transform_2(%arg0: i32) -> (i32, i32) {
    %c0_i32 = arith.constant 0 : i32
    %c0_i32_0 = arith.constant 0 : i32
    return %arg0, %c0_i32 : i32, i32
  }
  func.func @transform_3(%arg0: i32) -> (i32, i32) {
    %c0_i32 = arith.constant 0 : i32
    %c0_i32_0 = arith.constant 0 : i32
    %c0_i32_1 = arith.constant 0 : i32
    return %c0_i32, %c0_i32_0 : i32, i32
  }
  func.func @transform_4(%arg0: i32) -> (i32, i32) {
    %c0_i32 = arith.constant 0 : i32
    %c0_i32_0 = arith.constant 0 : i32
    %c0_i32_1 = arith.constant 0 : i32
    return %c0_i32, %c0_i32_0 : i32, i32
  }
  func.func @transform_5(%arg0: i32) -> (i32, i32) {
    %c0_i32 = arith.constant 0 : i32
    %c0_i32_0 = arith.constant 0 : i32
    return %arg0, %c0_i32 : i32, i32
  }
}

</mosaic_0001>

<bundles_post_ra>
// kernel: tpu_custom_call.1
= control target key start
LH: loop header
LB: loop body
LE: loop exit
PB: predicated region body
PF: predicated region fallthrough
CT: control target
= control target key end

     0   :  { %10 = vsyncpa [#allocation3], 0  ;;  %s1229_s0 = inlined_call_operand.hbm [shape: bf16[8,160], index: 0, kind: input, shape index: {}]   ;;  %s1230_s1 = inlined_call_operand.hbm [shape: f32[8,128], index: 1, kind: input, shape index: {}]   ;;  %s1231_s2 = inlined_call_operand.hbm [shape: f32[8,128], index: 2, kind: input, shape index: {}]   ;;  %s1232_s3 = inlined_call_operand.hbm [shape: bf16[160,896], index: 3, kind: input, shape index: {}]   ;;  %s1233_s4 = inlined_call_operand.vmem [shape: f32[1,896], index: 4, kind: input, shape index: {}]   ;;  %s1234_s5 = inlined_call_operand.hbm [shape: f32[8,512], index: 5, kind: output, shape index: {}]  }
   0x1   :  { %11 = vsyncpa [#allocation6], 0 }
   0x2   :  { %12 = vsyncpa [#allocation9], 0 }
   0x3   :  { %13 = vsyncpa [#allocation4], 0  ;;  %s1144_s18 = smov [#allocation5]   ;;  %s1145_s20 = smov [#allocation2]  }
   0x4   :  { %s30_s19 = sshll.u32 %s1144_s18, 4  ;;  %s20_s21 = sshll.u32 %s1145_s20, 4  ;;  %s31_s19 = int_to_ptr.vmem [resolvable:$true] %s30_s19  ;;  %s21_s21 = int_to_ptr.vmem [resolvable:$true] %s20_s21 }
   0x5   :  { %s1044_s22 = scalar_lea.vmem %s31_s19, 128  ;;  %p1049_p1 = scmp.lt.s32.totalorder %s31_s19, %s31_s19 }
   0x6   :  { %p1045_p0 = scmp.ne.s32.totalorder %s31_s19, %s1044_s22  ;;  %p1050_p2 = scmp.lt.s32.totalorder %s1044_s22, %s1044_s22 }
   0x8   :  { %p1051_p3 = por %p1050_p2, %p1049_p1 }
   0xa   :  { %p1052_p4 = pnand %p1051_p3, %p1045_p0 }
   0xc   :  { %1055 = shalt.err (!%p1052_p4)
}
   0xd   :  { %33 = dma.hbm_to_vmem [thread:$0]  %s1230_s1, 128, %s31_s19, [#allocation6]  }
   0xe   :  { %s1064_s25 = scalar_lea.vmem %s21_s21, 128  ;;  %p1069_p6 = scmp.lt.s32.totalorder %s21_s21, %s21_s21 }
   0xf   :  { %p1065_p5 = scmp.ne.s32.totalorder %s21_s21, %s1064_s25  ;;  %p1070_p7 = scmp.lt.s32.totalorder %s1064_s25, %s1064_s25 }
  0x11   :  { %p1071_p8 = por %p1070_p7, %p1069_p6 }
  0x13   :  { %p1072_p9 = pnand %p1071_p8, %p1065_p5 }
  0x15   :  { %1075 = shalt.err (!%p1072_p9)
}
  0x16   :  { %23 = dma.hbm_to_vmem [thread:$0]  %s1229_s0, 128, %s21_s21, [#allocation3]  }
  0x17   :  { %s1146_s28 = smov [#allocation7]   ;;  %s1147_s30 = smov [#allocation8]  }
  0x18   :  { %s40_s29 = sshll.u32 %s1146_s28, 4  ;;  %s49_s6 = sshll.u32 %s1147_s30, 4  ;;  %s41_s29 = int_to_ptr.vmem [resolvable:$true] %s40_s29  ;;  %s50_s6 = int_to_ptr.vmem [resolvable:$true] %s49_s6 }
  0x19   :  { %s1084_s7 = scalar_lea.vmem %s41_s29, 128  ;;  %p1089_p11 = scmp.lt.s32.totalorder %s41_s29, %s41_s29 }
  0x1a   :  { %p1085_p10 = scmp.ne.s32.totalorder %s41_s29, %s1084_s7  ;;  %p1090_p12 = scmp.lt.s32.totalorder %s1084_s7, %s1084_s7 }
  0x1c   :  { %p1091_p13 = por %p1090_p12, %p1089_p11 }
  0x1e   :  { %p1092_p0 = pnand %p1091_p13, %p1085_p10 }
  0x20   :  { %1095 = shalt.err (!%p1092_p0)
}
  0x21   :  { %43 = dma.hbm_to_vmem [thread:$0]  %s1231_s2, 128, %s41_s29, [#allocation6]  }
  0x22   :  { %s1104_s9 = scalar_lea.vmem %s50_s6, 8960  ;;  %p1109_p2 = scmp.lt.s32.totalorder %s50_s6, %s50_s6 }
  0x23   :  { %p1105_p1 = scmp.ne.s32.totalorder %s50_s6, %s1104_s9  ;;  %p1110_p3 = scmp.lt.s32.totalorder %s1104_s9, %s1104_s9 }
  0x25   :  { %p1111_p4 = por %p1110_p3, %p1109_p2 }
  0x27   :  { %p1112_p5 = pnand %p1111_p4, %p1105_p1 }
  0x29   :  { %1115 = shalt.err (!%p1112_p5)
}
  0x2a   :  { %s1148_s0 = smov 448   ;;  %s1149_s10 = smov 28  }
  0x2b   :  { %55 = dma.hbm_to_vmem [thread:$0]  %s1232_s3, 8960, %s50_s6, [#allocation9], %s1148_s0, %s1148_s0, %s1149_s10  }
  0x2c   :  { %1136 = dma.done.wait [#allocation3], 128  }
  0x2d   :  { %1137 = vsyncadd [#allocation3], 4294967168 }
  0x2e   :  { %1138 = dma.done.wait [#allocation6], 256  }
  0x2f   :  { %1139 = vsyncadd [#allocation6], 4294967040 }
  0x30   :  { %1140 = dma.done.wait [#allocation9], 8960  }
  0x31   :  { %1141 = vsyncadd [#allocation9], 4294958336  ;;  %v908_v0 = vld [vmem:[#allocation8 + $0x18c] ss:$28 sps:$4 sm:$0xff]   ;;  %v910_v1 = vld [vmem:[#allocation8 + $0x194] ss:$28 sps:$4 sm:$0xff]  }
  0x32   :  { %560 = vmatprep.subr.bf16.mxu0 %v908_v0  ;;  %v912_v2 = vld [vmem:[#allocation8 + $0x188] ss:$28 sps:$4 sm:$0xff]   ;;  %v913_v3 = vld [vmem:[#allocation8 + $0x190] ss:$28 sps:$4 sm:$0xff]   ;;  %601 = vmatprep.subr.bf16.mxu1 %v910_v1  ;;  %v916_v5 = vld [vmem:[#allocation8 + $0x15c] ss:$28 sps:$4 sm:$0xff]  }
  0x33   :  { %v914_v4 = vld [vmem:[#allocation8 + $0x154] ss:$28 sps:$4 sm:$0xff]   ;;  %561 = vmatpush1.bf16.msra.mxu0 %v912_v2  ;;  %602 = vmatpush1.bf16.msra.mxu1 %v913_v3  ;;  %v920_v8 = vld [vmem:[#allocation8 + $0x11c] ss:$28 sps:$4 sm:$0xff]   ;;  %v922_v9 = vld [vmem:[#allocation8 + $0x124] ss:$28 sps:$4 sm:$0xff]  }
  0x34   :  { %v918_v6 = vld [vmem:[#allocation8 + $0x150] ss:$28 sps:$4 sm:$0xff]   ;;  %562 = vmatprep.subr.bf16.mxu0 %v914_v4  ;;  %v919_v7 = vld [vmem:[#allocation8 + $0x158] ss:$28 sps:$4 sm:$0xff]   ;;  %603 = vmatprep.subr.bf16.mxu1 %v916_v5  ;;  %v925_v11 = vld [vmem:[#allocation8 + $0x120] ss:$28 sps:$4 sm:$0xff]  }
  0x35   :  { %v924_v10 = vld [vmem:[#allocation8 + $0x118] ss:$28 sps:$4 sm:$0xff]   ;;  %v926_v12 = vld [vmem:[#allocation8 + $0xe4] ss:$28 sps:$4 sm:$0xff]   ;;  %v928_v13 = vld [vmem:[#allocation8 + $0xec] ss:$28 sps:$4 sm:$0xff]  }
  0x36   :  { %v930_v14 = vld [vmem:[#allocation8 + $0xe0] ss:$28 sps:$4 sm:$0xff]   ;;  %v931_v15 = vld [vmem:[#allocation8 + $0xe8] ss:$28 sps:$4 sm:$0xff]   ;;  %v934_v17 = vld [vmem:[#allocation8 + $0xb4] ss:$28 sps:$4 sm:$0xff]  }
  0x37   :  { %563 = vmatpush1.bf16.msra.mxu0 %v918_v6  ;;  %604 = vmatpush1.bf16.msra.mxu1 %v919_v7  ;;  %v932_v16 = vld [vmem:[#allocation8 + $0xac] ss:$28 sps:$4 sm:$0xff]   ;;  %v938_v20 = vld [vmem:[#allocation8 + $0x74] ss:$28 sps:$4 sm:$0xff]   ;;  %v940_v21 = vld [vmem:[#allocation8 + $0x7c] ss:$28 sps:$4 sm:$0xff]  }
  0x38   :  { %564 = vmatprep.subr.bf16.mxu0 %v920_v8  ;;  %605 = vmatprep.subr.bf16.mxu1 %v922_v9  ;;  %v936_v18 = vld [vmem:[#allocation8 + $0xa8] ss:$28 sps:$4 sm:$0xff]   ;;  %v937_v19 = vld [vmem:[#allocation8 + $0xb0] ss:$28 sps:$4 sm:$0xff]   ;;  %v943_v23 = vld [vmem:[#allocation8 + $0x78] ss:$28 sps:$4 sm:$0xff]  }
  0x39   :  { %v942_v22 = vld [vmem:[#allocation8 + $0x70] ss:$28 sps:$4 sm:$0xff]   ;;  %v944_v24 = vld [vmem:[#allocation8 + $0x3c] ss:$28 sps:$4 sm:$0xff]   ;;  %v946_v25 = vld [vmem:[#allocation8 + $0x44] ss:$28 sps:$4 sm:$0xff]  }
  0x3a   :  { %v948_v26 = vld [vmem:[#allocation8 + $0x38] ss:$28 sps:$4 sm:$0xff]   ;;  %v949_v27 = vld [vmem:[#allocation8 + $0x40] ss:$28 sps:$4 sm:$0xff]   ;;  %v952_v29 = vld [vmem:[#allocation8 + $0xc] ss:$28 sps:$4 sm:$0xff]  }
  0x3b   :  { %565 = vmatpush1.bf16.msra.mxu0 %v924_v10  ;;  %606 = vmatpush1.bf16.msra.mxu1 %v925_v11  ;;  %v950_v28 = vld [vmem:[#allocation8 + $0x4] ss:$28 sps:$4 sm:$0xff]   ;;  %v72_v31 = vld [vmem:[#allocation2] sm:$0xff]  ;;  %vm556_vm0 = vcmask 261120   ;;  %v956_v34 = vld [vmem:[#allocation8 + $0x1fc] ss:$28 sps:$4 sm:$0xff]   ;;  %v155_v10 = vlaneseq }
  0x3c   :  { %566 = vmatprep.subr.bf16.mxu0 %v926_v12  ;;  %607 = vmatprep.subr.bf16.mxu1 %v928_v13  ;;  %v954_v30 = vld [vmem:[#allocation8] ss:$28 sps:$4 sm:$0xff]   ;;  %v955_v32 = vld [vmem:[#allocation8 + $0x8] ss:$28 sps:$4 sm:$0xff]   ;;  %v820_v33 = vcombine.high %v72_v31, %v72_v31  ;;  %v960_v36 = vld [vmem:[#allocation8 + $0x1f8] ss:$28 sps:$4 sm:$0xff]   ;;  %v1196_v43 = vcombine.low %v72_v31, %v72_v31 }
  0x3d   :  { %v958_v35 = vld [vmem:[#allocation8 + $0x204] ss:$28 sps:$4 sm:$0xff]   ;;  %v964_v39 = vld [vmem:[#allocation8 + $0x1cc] ss:$28 sps:$4 sm:$0xff]   ;;  %v972_v42 = vld [vmem:[#allocation8 + $0x19c] ss:$28 sps:$4 sm:$0xff]  }
  0x3e   :  { %891 = vmatprep.mubr.msk.bf16.mxu0 %vm556_vm0, %v820_v33  ;;  %892 = vmatprep.mubr.msk.bf16.mxu1 %vm556_vm0, %v820_v33  ;;  %v961_v37 = vld [vmem:[#allocation8 + $0x200] ss:$28 sps:$4 sm:$0xff]   ;;  %v967_v41 = vld [vmem:[#allocation8 + $0x1c8] ss:$28 sps:$4 sm:$0xff]   ;;  %v970_v44 = vld [vmem:[#allocation8 + $0x198] ss:$28 sps:$4 sm:$0xff]  }
  0x3f   :  { %567 = vmatpush1.bf16.msra.mxu0 %v930_v14  ;;  %608 = vmatpush1.bf16.msra.mxu1 %v931_v15  ;;  %v962_v38 = vld [vmem:[#allocation8 + $0x1c4] ss:$28 sps:$4 sm:$0xff]   ;;  %v1150_v46 = vmov 0   ;;  %v980_v50 = vld [vmem:[#allocation8 + $0x12c] ss:$28 sps:$4 sm:$0xff]   ;;  %v156_v11 = vshrl.u32 %v155_v10, 7 }
  0x40   :  { %568 = vmatprep.subr.bf16.mxu0 %v932_v16  ;;  %609 = vmatprep.subr.bf16.mxu1 %v934_v17  ;;  %v966_v40 = vld [vmem:[#allocation8 + $0x1c0] ss:$28 sps:$4 sm:$0xff]   ;;  %v977_v49 = vld [vmem:[#allocation8 + $0x168] ss:$28 sps:$4 sm:$0xff]   ;;  %v981_v52 = vld [vmem:[#allocation8 + $0x130] ss:$28 sps:$4 sm:$0xff]  }
  0x41   :  { %v973_v45 = vld [vmem:[#allocation8 + $0x1a0] ss:$28 sps:$4 sm:$0xff]   ;;  %v978_v51 = vld [vmem:[#allocation8 + $0x128] ss:$28 sps:$4 sm:$0xff]   ;;  %v984_v53 = vld [vmem:[#allocation8 + $0xf4] ss:$28 sps:$4 sm:$0xff]  }
  0x42   :  { %v976_v47 = vld [vmem:[#allocation8 + $0x164] ss:$28 sps:$4 sm:$0xff]   ;;  %v982_v54 = vld [vmem:[#allocation8 + $0xf0] ss:$28 sps:$4 sm:$0xff]   ;;  %v985_v55 = vld [vmem:[#allocation8 + $0xf8] ss:$28 sps:$4 sm:$0xff]  }
  0x43   :  { %569 = vmatpush1.bf16.msra.mxu0 %v936_v18  ;;  %610 = vmatpush1.bf16.msra.mxu1 %v937_v19  ;;  %v974_v48 = vld [vmem:[#allocation8 + $0x160] ss:$28 sps:$4 sm:$0xff]   ;;  %v986_v57 = vld [vmem:[#allocation8 + $0xb8] ss:$28 sps:$4 sm:$0xff]   ;;  %v993_v61 = vld [vmem:[#allocation8 + $0x88] ss:$28 sps:$4 sm:$0xff]  }
  0x44   :  { %570 = vmatprep.subr.bf16.mxu0 %v938_v20  ;;  %611 = vmatprep.subr.bf16.mxu1 %v940_v21  ;;  %v988_v56 = vld [vmem:[#allocation8 + $0xbc] ss:$28 sps:$4 sm:$0xff]   ;;  %v992_v59 = vld [vmem:[#allocation8 + $0x84] ss:$28 sps:$4 sm:$0xff]   ;;  %v996_v62 = vld [vmem:[#allocation8 + $0x4c] ss:$28 sps:$4 sm:$0xff]  }
  0x45   :  { %v989_v58 = vld [vmem:[#allocation8 + $0xc0] ss:$28 sps:$4 sm:$0xff]   ;;  %v994_v63 = vld [vmem:[#allocation8 + $0x48] ss:$28 sps:$4 sm:$0xff]   ;;  %v997_v0 = vld [vmem:[#allocation8 + $0x50] ss:$28 sps:$4 sm:$0xff]  }
  0x46   :  { %v990_v60 = vld [vmem:[#allocation8 + $0x80] ss:$28 sps:$4 sm:$0xff]   ;;  %v1000_v1 = vld [vmem:[#allocation8 + $0x14] ss:$28 sps:$4 sm:$0xff]   ;;  %v1004_v4 = vld [vmem:[#allocation8 + $0x20c] ss:$28 sps:$4 sm:$0xff]  }
  0x47   :  { %571 = vmatpush1.bf16.msra.mxu0 %v942_v22  ;;  %612 = vmatpush1.bf16.msra.mxu1 %v943_v23  ;;  %v998_v2 = vld [vmem:[#allocation8 + $0x10] ss:$28 sps:$4 sm:$0xff]   ;;  %v1001_v3 = vld [vmem:[#allocation8 + $0x18] ss:$28 sps:$4 sm:$0xff]   ;;  %v1002_v5 = vld [vmem:[#allocation8 + $0x208] ss:$28 sps:$4 sm:$0xff]  }
  0x48   :  { %572 = vmatprep.subr.bf16.mxu0 %v944_v24  ;;  %613 = vmatprep.subr.bf16.mxu1 %v946_v25  ;;  %v1005_v6 = vld [vmem:[#allocation8 + $0x210] ss:$28 sps:$4 sm:$0xff]   ;;  %v1009_v9 = vld [vmem:[#allocation8 + $0x1d8] ss:$28 sps:$4 sm:$0xff]   ;;  %v165_v12 = vsub.s32 2, %v156_v11  ;;  %v161_v15 = vsub.s32 1, %v156_v11 }
  0x49   :  { %v1008_v7 = vld [vmem:[#allocation8 + $0x1d4] ss:$28 sps:$4 sm:$0xff]   ;;  %v153_v13 = vld [vmem:[%s1233_s4] sm:$0xff]  ;;  %v157_v18 = vsub.s32 0, %v156_v11  ;;  %s1151_s4 = smov [#allocation10]  }
  0x4a   :  { %v1006_v8 = vld [vmem:[#allocation8 + $0x1d0] ss:$28 sps:$4 sm:$0xff]   ;;  %v166_v14 = vrot.slane %v153_v13, %v165_v12  ;;  %v162_v23 = vrot.slane %v153_v13, %v161_v15  ;;  %s808_s13 = sshll.u32 %s1151_s4, 4  ;;  %s809_s13 = int_to_ptr.vmem [resolvable:$true] %s808_s13 }
  0x4b   :  { %573 = vmatpush1.bf16.msra.mxu0 %v948_v26  ;;  %614 = vmatpush1.bf16.msra.mxu1 %v949_v27  ;;  %v158_v26 = vrot.slane %v153_v13, %v157_v18  ;;  %s1116_s14 = scalar_lea.vmem %s809_s13, 512  ;;  %p1121_p7 = scmp.lt.s32.totalorder %s809_s13, %s809_s13 }
  0x4c   :  { %574 = vmatprep.subr.bf16.mxu0 %v950_v28  ;;  %615 = vmatprep.subr.bf16.mxu1 %v952_v29  ;;  %p1117_p6 = scmp.ne.s32.totalorder %s809_s13, %s1116_s14  ;;  %p1122_p8 = scmp.lt.s32.totalorder %s1116_s14, %s1116_s14 }
  0x4e   :  { %p1123_p9 = por %p1122_p8, %p1121_p7 }
  0x4f   :  { %575 = vmatpush1.bf16.msra.mxu0 %v954_v30  ;;  %616 = vmatpush1.bf16.msra.mxu1 %v955_v32 }
  0x50   :  { %588 = vmatprep.subr.bf16.mxu0 %v956_v34  ;;  %629 = vmatprep.subr.bf16.mxu1 %v958_v35  ;;  %p1124_p10 = pnand %p1123_p9, %p1117_p6 }
  0x53   :  { %589 = vmatpush2.bf16.msra.mxu0 %v960_v36  ;;  %630 = vmatpush2.bf16.msra.mxu1 %v961_v37  ;;  %v169_v36 = vsub.s32 3, %v156_v11 }
  0x54   :  { %590 = vmatprep.subr.bf16.mxu0 %v962_v38  ;;  %631 = vmatprep.subr.bf16.mxu1 %v964_v39 }
  0x55   :  { %v170_v39 = vrot.slane %v153_v13, %v169_v36  ;;  %v794_v36 = vld [vmem:[#allocation7] sm:$0xff] }
  0x57   :  { %591 = vmatpush2.bf16.msra.mxu0 %v966_v40  ;;  %632 = vmatpush2.bf16.msra.mxu1 %v967_v41 }
  0x58   :  { %642 = vmatprep.subr.bf16.mxu0 %v972_v42  ;;  %683 = vmatprep.subr.bf16.mxu1 %v1150_v46 }
  0x5a   :  { %593 = vmatmul.mubr.bf16.vlgmr.msra.gmra.mxu0 %v1196_v43  ;;  %634 = vmatmul.mubr.bf16.vlgmr.msra.gmra.mxu1 %v1196_v43 }
  0x5b   :  { %643 = vmatpush1.bf16.msra.mxu0 %v970_v44  ;;  %684 = vmatpush1.bf16.msra.mxu1 %v973_v45  ;;  %v181_v44 = vsub.s32 6, %v156_v11 }
  0x5c   :  { %644 = vmatprep.subr.bf16.mxu0 %v976_v47  ;;  %685 = vmatprep.subr.bf16.mxu1 %v1150_v46  ;;  %v177_v47 = vsub.s32 5, %v156_v11 }
  0x5d   :  { %893 = vmatprep.mubr.msk.bf16.mxu0 %vm556_vm0, %v820_v33  ;;  %894 = vmatprep.mubr.msk.bf16.mxu1 %vm556_vm0, %v820_v33 }
  0x5f   :  { %645 = vmatpush1.bf16.msra.mxu0 %v974_v48  ;;  %686 = vmatpush1.bf16.msra.mxu1 %v977_v49 }
  0x60   :  { %646 = vmatprep.subr.bf16.mxu0 %v980_v50  ;;  %687 = vmatprep.subr.bf16.mxu1 %v1150_v46  ;;  %v182_v50 = vrot.slane %v153_v13, %v181_v44 }
  0x63   :  { %647 = vmatpush1.bf16.msra.mxu0 %v978_v51  ;;  %688 = vmatpush1.bf16.msra.mxu1 %v981_v52 }
  0x64   :  { %648 = vmatprep.subr.bf16.mxu0 %v984_v53  ;;  %689 = vmatprep.subr.bf16.mxu1 %v1150_v46  ;;  %v178_v53 = vrot.slane %v153_v13, %v177_v47 }
  0x67   :  { %649 = vmatpush1.bf16.msra.mxu0 %v982_v54  ;;  %690 = vmatpush1.bf16.msra.mxu1 %v985_v55 }
  0x68   :  { %650 = vmatprep.subr.bf16.mxu0 %v988_v56  ;;  %691 = vmatprep.subr.bf16.mxu1 %v1150_v46 }
  0x6b   :  { %651 = vmatpush1.bf16.msra.mxu0 %v986_v57  ;;  %692 = vmatpush1.bf16.msra.mxu1 %v989_v58 }
  0x6c   :  { %652 = vmatprep.subr.bf16.mxu0 %v992_v59  ;;  %693 = vmatprep.subr.bf16.mxu1 %v1150_v46 }
  0x6f   :  { %653 = vmatpush1.bf16.msra.mxu0 %v990_v60  ;;  %694 = vmatpush1.bf16.msra.mxu1 %v993_v61 }
  0x70   :  { %654 = vmatprep.subr.bf16.mxu0 %v996_v62  ;;  %695 = vmatprep.subr.bf16.mxu1 %v1150_v46 }
  0x73   :  { %655 = vmatpush1.bf16.msra.mxu0 %v994_v63  ;;  %696 = vmatpush1.bf16.msra.mxu1 %v997_v0 }
  0x74   :  { %656 = vmatprep.subr.bf16.mxu0 %v1000_v1  ;;  %697 = vmatprep.subr.bf16.mxu1 %v1150_v46 }
  0x77   :  { %657 = vmatpush1.bf16.msra.mxu0 %v998_v2  ;;  %698 = vmatpush1.bf16.msra.mxu1 %v1001_v3 }
  0x78   :  { %670 = vmatprep.subr.bf16.mxu0 %v1004_v4  ;;  %711 = vmatprep.subr.bf16.mxu1 %v1150_v46 }
  0x7b   :  { %671 = vmatpush2.bf16.msra.mxu0 %v1002_v5  ;;  %712 = vmatpush2.bf16.msra.mxu1 %v1005_v6 }
  0x7c   :  { %672 = vmatprep.subr.bf16.mxu0 %v1008_v7  ;;  %713 = vmatprep.subr.bf16.mxu1 %v1150_v46 }
  0x7f   :  { %673 = vmatpush2.bf16.msra.mxu0 %v1006_v8  ;;  %714 = vmatpush2.bf16.msra.mxu1 %v1009_v9 }
  0x82   :  { %675 = vmatmul.mubr.bf16.vlgmr.msra.gmra.mxu0 %v1196_v43  ;;  %716 = vmatmul.mubr.bf16.vlgmr.msra.gmra.mxu1 %v1196_v43  ;;  %v173_v43 = vsub.s32 4, %v156_v11 }
  0x84   :  { %v174_v49 = vrot.slane %v153_v13, %v173_v43 }
 0x11a   :  { %v594_v16 = vpop.f32.mrf.mxu0  ;;  %v635_v17 = vpop.f32.mrf.mxu1 }
 0x11b   :  { %v636_v19 = vadd.f32 %v635_v17, %v166_v14  ;;  %v595_v31 = vadd.f32 %v594_v16, %v158_v26 }
 0x11c   :  { %v596_v20 = vpop.f32.mrf.mxu0  ;;  %v637_v21 = vpop.f32.mrf.mxu1 }
 0x11d   :  { %v741_v22 = vpack.c.bf16 %v636_v19, %v636_v19  ;;  %v597_v30 = vadd.f32 %v596_v20, %v162_v23  ;;  %v723_v33 = vpack.c.bf16 %v595_v31, %v595_v31  ;;  %v638_v40 = vadd.f32 %v637_v21, %v170_v39  ;;  %v790_v20 = vld [vmem:[#allocation5] sm:$0xff] }
 0x11e   :  { %v598_v24 = vpop.f32.mrf.mxu0  ;;  %v639_v25 = vpop.f32.mrf.mxu1 }
 0x11f   :  { %v897_v27 = vmul.bf16 3216621497, %v741_v22  ;;  %v732_v32 = vpack.c.bf16 %v597_v30, %v597_v30  ;;  %v895_v35 = vmul.bf16 3216621497, %v723_v33  ;;  %v750_v41 = vpack.c.bf16 %v638_v40, %v638_v40 }
 0x120   :  { %v599_v28 = vpop.f32.mrf.mxu0  ;;  %v640_v29 = vpop.f32.mrf.mxu1 }
 0x121   :  { %1010 = vpow.bf16 %v897_v27  ;;  %v896_v34 = vmul.bf16 3216621497, %v732_v32  ;;  %v898_v46 = vmul.bf16 3216621497, %v750_v41 }
 0x123   :  { %1012 = vpow.bf16 %v896_v34 }
 0x124   :  { %1014 = vpow.bf16 %v895_v35 }
 0x12f   :  { %v1011_v37 = vpop.eup %1010 }
 0x130   :  { %v746_v38 = vadd.bf16 1065369472, %v1011_v37 }
 0x131   :  { %v1013_v42 = vpop.eup %1012 }
 0x132   :  { %1016 = vrcp.bf16 %v746_v38  ;;  %v1015_v45 = vpop.eup %1014  ;;  %v737_v48 = vadd.bf16 1065369472, %v1013_v42 }
 0x133   :  { %v728_v51 = vadd.bf16 1065369472, %v1015_v45  ;;  %1018 = vpow.bf16 %v898_v46 }
 0x134   :  { %1020 = vrcp.bf16 %v737_v48 }
 0x135   :  { %1022 = vrcp.bf16 %v728_v51 }
 0x140   :  { %v1017_v52 = vpop.eup %1016 }
 0x141   :  { %v748_v54 = vmul.bf16 1065369472, %v1017_v52  ;;  %v1019_v10 = vpop.eup %1018 }
 0x142   :  { %v676_v55 = vpop.f32.mrf.mxu0  ;;  %v717_v56 = vpop.f32.mrf.mxu1  ;;  %v755_v13 = vadd.bf16 1065369472, %v1019_v10 }
 0x143   :  { %v677_v57 = vadd.f32 %v676_v55, %v174_v49  ;;  %v1217_v58 = vadd.f32 %v717_v56, %v182_v50  ;;  %v749_v61 = vunpack.c.l.bf16 %v748_v54  ;;  %v1021_v11 = vpop.eup %1020 }
 0x144   :  { %v678_v59 = vpop.f32.mrf.mxu0  ;;  %v719_v60 = vpop.f32.mrf.mxu1  ;;  %v739_v14 = vmul.bf16 1065369472, %v1021_v11 }
 0x145   :  { %v759_v62 = vpack.c.bf16 %v677_v57, %v677_v57  ;;  %v1220_v63 = vmul.f32 10.0, %v1217_v58  ;;  %v679_v0 = vadd.f32 %v678_v59, %v178_v53  ;;  %800 = vst [vmem:[#allocation10 + $0x10] sm:$0xff] %v749_v61  ;;  %v1023_v12 = vpop.eup %1022 }
 0x146   :  { %v680_v1 = vpop.f32.mrf.mxu0  ;;  %v720_v2 = vpop.f32.mrf.mxu1  ;;  %v730_v15 = vmul.bf16 1065369472, %v1023_v12  ;;  %v740_v17 = vunpack.c.l.bf16 %v739_v14 }
 0x147   :  { %v899_v3 = vmul.bf16 3216621497, %v759_v62  ;;  %v772_v4 = vand.u32 2147483647, %v1220_v63  ;;  %v768_v5 = vpack.c.bf16 %v679_v0, %v679_v0  ;;  %v785_v41 = vmax.f32 %v1220_v63, 0.0 }
 0x148   :  { %v681_v6 = vpop.f32.mrf.mxu0  ;;  %v721_v7 = vpop.f32.mrf.mxu1  ;;  %v731_v21 = vunpack.c.l.bf16 %v730_v15  ;;  %v791_v25 = vmul.f32 %v790_v20, %v740_v17  ;;  %vm788_vm2 = vcmp.gt.f32.partialorder %v1220_v63, 20.0 }
 0x149   :  { %1024 = vpow.bf16 %v899_v3  ;;  %v773_v8 = vsub.f32 0.0, %v772_v4 }
 0x14a   :  { %1026 = vtanh.bf16 %v768_v5 }
 0x14b   :  { %v774_v9 = vmul.f32 1.442695, %v773_v8 }
 0x14d   :  { %1028 = vpow2.f32 %v774_v9 }
 0x14e   :  { %1030 = vrcp.bf16 %v755_v13 }
 0x157   :  { %v1025_v16 = vpop.eup %1024 }
 0x158   :  { %v1027_v18 = vpop.eup %1026  ;;  %v764_v19 = vadd.bf16 1065369472, %v1025_v16 }
 0x159   :  { %v770_v22 = vunpack.c.l.bf16 %v1027_v18 }
 0x15a   :  { %v1029_v23 = vpop.eup %1028  ;;  %1032 = vrcp.bf16 %v764_v19 }
 0x15b   :  { %v776_v24 = vadd.f32 1.0, %v1029_v23  ;;  %v792_v26 = vmul.f32 %v770_v22, %v731_v21  ;;  %v779_v28 = vmul.f32 -0.5, %v1029_v23  ;;  %v782_v33 = vand.u32 2147483647, %v1029_v23 }
 0x15c   :  { %v1031_v29 = vpop.eup %1030 }
 0x15d   :  { %1034 = vlog2.f32 %v776_v24  ;;  %v793_v27 = vadd.f32 %v792_v26, %v791_v25  ;;  %v780_v30 = vadd.f32 1.0, %v779_v28  ;;  %v757_v31 = vmul.bf16 1065369472, %v1031_v29 }
 0x15e   :  { %vm783_vm1 = vcmp.lt.f32.partialorder %v782_v33, 0.0004427343 }
 0x15f   :  { %798 = vst [vmem:[#allocation10] sm:$0xff] %v793_v27  ;;  %v781_v39 = vmul.f32 %v1029_v23, %v780_v30  ;;  %v758_v40 = vunpack.c.l.bf16 %v757_v31 }
 0x161   :  { %v796_v44 = vmul.f32 %v770_v22, %v758_v40 }
 0x168   :  { %v1033_v32 = vpop.eup %1032 }
 0x169   :  { %v766_v34 = vmul.bf16 1065369472, %v1033_v32 }
 0x16a   :  { %v1035_v35 = vpop.eup %1034 }
 0x16b   :  { %v767_v37 = vunpack.c.l.bf16 %v766_v34  ;;  %v778_v38 = vmul.f32 0.6931472, %v1035_v35 }
 0x16d   :  { %v784_v42 = vsel %vm783_vm1, %v781_v39, %v778_v38  ;;  %v795_v43 = vmul.f32 %v794_v36, %v767_v37 }
 0x16e   :  { %v786_v45 = vadd.f32 %v785_v41, %v784_v42 }
 0x16f   :  { %v797_v46 = vadd.f32 %v796_v44, %v795_v43 }
 0x170   :  { %v787_v47 = vmul.f32 0.1, %v786_v45 }
 0x171   :  { %799 = vst [vmem:[#allocation10 + $0x8] sm:$0xff] %v797_v46 }
 0x172   :  { %v789_v48 = vsel %vm788_vm2, %v1217_v58, %v787_v47 }
 0x173   :  { %801 = vst [vmem:[#allocation10 + $0x18] sm:$0xff] %v789_v48 }
 0x174   :  { %1127 = shalt.err (!%p1124_p10)
}
 0x175   :  { %811 = dma.vmem_to_hbm [thread:$0]  %s809_s13, 512, %s1234_s5, [#allocation4]  }
 0x176   :  { %1142 = dma.done.wait [#allocation4], 512  }
 0x177   :  { %1143 = vsyncadd [#allocation4], 4294966784 }
 0x178   :  { %815 = vsyncpa [#allocation3], 1 }
 0x179   :  { %816 = vsyncpa [#allocation6], 1 }
 0x17a   :  { %817 = vsyncpa [#allocation9], 1 }
 0x17b   :  { %818 = vsyncpa [#allocation4], 1 }

</bundles_post_ra>
